<compile_context>
chip_gen: v7x
topology: tpu7x:2x2x1
jax: 0.10.0
libtpu: 0.0.40
codegen_flags: <defaults>
</compile_context>

<pallas_src>
import jax
import jax.numpy as jnp
from jax.experimental import pallas as pl
from jax.experimental.pallas import tpu as pltpu


def _max4_kernel(x_ref, o_ref):
    # x_ref: (4, BP, tL) -- 4 pooling phases of a slab of flattened planes.
    # o_ref: (BP, tL)    -- pooled output slab (lane-dense).
    # Pure VPU work: 3 elementwise maxes; no XLU, no MXU, no transcendentals.
    o_ref[...] = jnp.maximum(
        jnp.maximum(x_ref[0], x_ref[1]),
        jnp.maximum(x_ref[2], x_ref[3]),
    )


def downsampling(x, *, target_block_bytes=4 * 1024 * 1024):
    """2x2 max pooling, stride 2, floor mode -- matches nn.MaxPool2d(2).

    x: (N, C, H, W) -> (N, C, H//2, W//2)
    """
    N, C, H, W = x.shape
    Ho, Wo = H // 2, W // 2
    if Ho == 0 or Wo == 0:
        return jnp.zeros((N, C, Ho, Wo), x.dtype)

    # PyTorch floor mode: drop trailing odd row/col (no-op for even sizes).
    x = x[:, :, : Ho * 2, : Wo * 2]

    P = N * C              # number of planes
    L = Ho * Wo            # flattened output plane -> dense lane axis
    itemsize = jnp.dtype(x.dtype).itemsize

    # Wrapper-side layout plumbing (free reshape, one XLA transpose, free reshape):
    # xp[2*a + b, p, i*Wo + j] == x[p, 2*i + a, 2*j + b]
    xp = (
        x.reshape(P, Ho, 2, Wo, 2)
        .transpose(2, 4, 0, 1, 3)          # (2, 2, P, Ho, Wo)
        .reshape(4, P, L)
    )

    # ---- block sizing (few-MiB blocks; double-buffered in+out fits v7x VMEM) ----
    LANE = 128
    SUB = 8 * max(1, 4 // itemsize)        # sublane granularity scaled by packing
    MAX_TL = 4096
    if L <= MAX_TL:
        tL = L                             # full trailing dim: always layout-legal
    else:
        tL = (MAX_TL // LANE) * LANE       # multiple of 128; ragged edge is masked

    per_phase_elems = max(1, target_block_bytes // (4 * itemsize))
    bp = per_phase_elems // max(tL, 1)
    if bp >= P or P <= SUB:
        BP = P                             # full dim: always layout-legal
    else:
        BP = max(SUB, (bp // SUB) * SUB)   # multiple of the sublane granule

    grid = (pl.cdiv(P, BP), pl.cdiv(L, tL))

    cost = pl.CostEstimate(
        flops=3 * P * L,
        transcendentals=0,
        bytes_accessed=(4 * P * L + P * L) * itemsize,
    )

    out2 = pl.pallas_call(
        _max4_kernel,
        out_shape=jax.ShapeDtypeStruct((P, L), x.dtype),
        grid_spec=pltpu.PrefetchScalarGridSpec(
            num_scalar_prefetch=0,
            grid=grid,
            in_specs=[pl.BlockSpec((4, BP, tL), lambda i, j: (0, i, j))],
            out_specs=pl.BlockSpec((BP, tL), lambda i, j: (i, j)),
        ),
        compiler_params=pltpu.CompilerParams(
            dimension_semantics=("parallel", "parallel"),
            vmem_limit_bytes=32 * 1024 * 1024,
        ),
        cost_estimate=cost,
    )(xp)

    return out2.reshape(N, C, Ho, Wo)


if __name__ == "__main__":
    key0, key1 = jax.random.split(jax.random.PRNGKey(0))
    down = jax.jit(downsampling)

    # Even spatial dims (typical case).
    x = jax.random.normal(key0, (2, 4, 16, 16), dtype=jnp.float32)
    out = jax.block_until_ready(down(x))
    N, C, H, W = x.shape
    ref = jnp.max(x.reshape(N, C, H // 2, 2, W // 2, 2), axis=(3, 5))
    assert out.shape == (2, 4, 8, 8), out.shape
    assert jnp.array_equal(out, ref), "mismatch vs reference maxpool (even dims)"

    # Odd spatial dims: floor mode drops the trailing row/col, like nn.MaxPool2d(2).
    x2 = jax.random.normal(key1, (2, 3, 17, 13), dtype=jnp.float32)
    out2 = jax.block_until_ready(down(x2))
    ref2 = jnp.max(x2[:, :, :16, :12].reshape(2, 3, 8, 2, 6, 2), axis=(3, 5))
    assert out2.shape == (2, 3, 8, 6), out2.shape
    assert jnp.array_equal(out2, ref2), "mismatch vs reference maxpool (odd dims)"

    print("KERNEL_OK")
</pallas_src>

<mosaic_0001>
module attributes {stable_mosaic.version = 11 : i64} {
  func.func @_max4_kernel(%arg0: i32, %arg1: i32, %arg2: memref<4x8x64xf32, #tpu.memory_space<vmem>>, %arg3: memref<8x64xf32, #tpu.memory_space<vmem>>) attributes {dimension_semantics = [#tpu.dimension_semantics<parallel>, #tpu.dimension_semantics<parallel>], iteration_bounds = array<i64: 1, 1>, scalar_prefetch = 0 : i64, scratch_operands = 0 : i64, tpu.core_type = #tpu.core_type<tc>, window_params = [{transform_indices = @transform_0, window_bounds = array<i64: 4, 8, 64>}, {transform_indices = @transform_1, window_bounds = array<i64: 8, 64>}]} {
    %c0 = arith.constant 0 : index
    %c0_0 = arith.constant 0 : index
    %c0_1 = arith.constant 0 : index
    %0 = vector.load %arg2[%c0, %c0_0, %c0_1] : memref<4x8x64xf32, #tpu.memory_space<vmem>>, vector<1x8x64xf32>
    %1 = vector.shape_cast %0 : vector<1x8x64xf32> to vector<8x64xf32>
    %c1 = arith.constant 1 : index
    %c0_2 = arith.constant 0 : index
    %c0_3 = arith.constant 0 : index
    %2 = vector.load %arg2[%c1, %c0_2, %c0_3] : memref<4x8x64xf32, #tpu.memory_space<vmem>>, vector<1x8x64xf32>
    %3 = vector.shape_cast %2 : vector<1x8x64xf32> to vector<8x64xf32>
    %4 = arith.maximumf %1, %3 : vector<8x64xf32>
    %c2 = arith.constant 2 : index
    %c0_4 = arith.constant 0 : index
    %c0_5 = arith.constant 0 : index
    %5 = vector.load %arg2[%c2, %c0_4, %c0_5] : memref<4x8x64xf32, #tpu.memory_space<vmem>>, vector<1x8x64xf32>
    %6 = vector.shape_cast %5 : vector<1x8x64xf32> to vector<8x64xf32>
    %c3 = arith.constant 3 : index
    %c0_6 = arith.constant 0 : index
    %c0_7 = arith.constant 0 : index
    %7 = vector.load %arg2[%c3, %c0_6, %c0_7] : memref<4x8x64xf32, #tpu.memory_space<vmem>>, vector<1x8x64xf32>
    %8 = vector.shape_cast %7 : vector<1x8x64xf32> to vector<8x64xf32>
    %9 = arith.maximumf %6, %8 : vector<8x64xf32>
    %10 = arith.maximumf %4, %9 : vector<8x64xf32>
    %c0_8 = arith.constant 0 : index
    %c0_9 = arith.constant 0 : index
    %11 = vector.load %arg3[%c0_8, %c0_9] : memref<8x64xf32, #tpu.memory_space<vmem>>, vector<8x64xf32>
    tpu.vector_store %arg3[%c0_8, %c0_9], %10 {strides = array<i32>} : memref<8x64xf32, #tpu.memory_space<vmem>>, vector<8x64xf32>,
    return
  }
  func.func @transform_0(%arg0: i32, %arg1: i32) -> (i32, i32, i32) {
    %c0_i32 = arith.constant 0 : i32
    %c0_i32_0 = arith.constant 0 : i32
    return %c0_i32, %arg0, %arg1 : i32, i32, i32
  }
  func.func @transform_1(%arg0: i32, %arg1: i32) -> (i32, i32) {
    %c0_i32 = arith.constant 0 : i32
    return %arg0, %arg1 : i32, i32
  }
}

</mosaic_0001>

<bundles_post_ra>
// kernel: downsampling.1
= control target key start
LH: loop header
LB: loop body
LE: loop exit
PB: predicated region body
PF: predicated region fallthrough
CT: control target
= control target key end

     0   :  { %vm18_vm0 = vcmask 523264   ;;  %s52_s0 = inlined_call_operand.vmem [shape: f32[4,8,64], index: 0, kind: input, shape index: {}]   ;;  %s53_s1 = inlined_call_operand.vmem [shape: f32[8,64], index: 1, kind: output, shape index: {}]  }
   0x1   :  { %v8_v0 = vld [vmem:[%s52_s0] sm:$0xff]  ;;  %v24_v1 = vld [vmem:[%s52_s0 + $0x8] sm:$0xff]  ;;  %v25_v2 = vld [vmem:[%s52_s0 + $0x10] sm:$0xff] }
   0x2   :  { %v11_v3 = vmax.f32 %v8_v0, %v24_v1  ;;  %v26_v4 = vld [vmem:[%s52_s0 + $0x18] sm:$0xff] }
   0x3   :  { %v16_v5 = vmax.f32 %v25_v2, %v26_v4 }
   0x5   :  { %v17_v6 = vmax.f32 %v11_v3, %v16_v5 }
   0x7   :  { %19 = vst.msk [vmem:[%s53_s1] sm:$0xff] %vm18_vm0, %v17_v6 }

</bundles_post_ra>
